<compile_context>
chip_gen: v7x
topology: tpu7x:2x2x1
jax: 0.10.0
libtpu: 0.0.40
codegen_flags: <defaults>
</compile_context>

<pallas_src>
import functools

import jax
import jax.numpy as jnp
from jax import lax
from jax.experimental import pallas as pl
from jax.experimental.pallas import tpu as pltpu


def _lstm_kernel(x_ref, w_ih_t_ref, w_hh_t_ref, b_ref, slab_ref):
    # x_ref:      (T*B_pad, I)      time-major, batch rows padded to 8 sublanes
    # w_ih_t_ref: (I, 4H)           columns permuted to [i, f, o, g]
    # w_hh_t_ref: (H, 4H)           columns permuted to [i, f, o, g]
    # b_ref:      (1, 4H)           b_ih + b_hh, permuted
    # slab_ref:   (B_pad, (T+1)*H)  [h_0 | h_1 | ... | h_{T-1} | c_T]
    Bp = slab_ref.shape[0]
    H = w_hh_t_ref.shape[0]
    T = slab_ref.shape[1] // H - 1

    # (1) Hoisted input projection + folded bias: one well-shaped MXU matmul
    #     (M = T*B_pad) covering every timestep, off the serial path.
    pre = jnp.dot(x_ref[...], w_ih_t_ref[...],
                  preferred_element_type=jnp.float32) + b_ref[...]   # (T*Bp, 4H)

    w_hh_t = w_hh_t_ref[...]                                         # (H, 4H)

    h = jnp.zeros((Bp, H), jnp.float32)
    c = jnp.zeros((Bp, H), jnp.float32)
    outs = []

    # (2) Fully-unrolled in-kernel time loop (static trip count, static,
    #     sublane-aligned slices).  Only the (Bp,H)@(H,4H) recurrent matmul and
    #     the gate nonlinearities are serial.  Padded batch rows compute
    #     harmless garbage (rows are independent) and are dropped in the
    #     wrapper.
    for t in range(T):
        gates = pre[t * Bp:(t + 1) * Bp, :] + jnp.dot(
            h, w_hh_t, preferred_element_type=jnp.float32)           # (Bp, 4H)

        # Gate order is [i, f, o, g]: one contiguous "sigmoid" over 3H lanes
        # via the exact identity sigmoid(x) = 0.5*tanh(0.5*x) + 0.5 (single EUP
        # tanh + cheap VPU fma), plus one tanh over H lanes.
        sig = 0.5 * jnp.tanh(0.5 * gates[:, :3 * H]) + 0.5
        i_g = sig[:, 0 * H:1 * H]
        f_g = sig[:, 1 * H:2 * H]
        o_g = sig[:, 2 * H:3 * H]
        g_g = jnp.tanh(gates[:, 3 * H:4 * H])

        c = f_g * c + i_g * g_g
        h = o_g * jnp.tanh(c)
        outs.append(h)

    # (3) Single lane-dense writeback: all timesteps plus the final cell state
    #     in one (Bp, (T+1)*H) store.  h_n is recovered from the last timestep
    #     in the wrapper -- no separate epilogue outputs.
    slab_ref[...] = jnp.concatenate(outs + [c], axis=1).astype(slab_ref.dtype)


def _permute_gates_ifgo_to_ifog(a):
    """Permute PyTorch gate stacking [i, f, g, o] -> [i, f, o, g] along axis 0."""
    i, f, g, o = jnp.split(a, 4, axis=0)
    return jnp.concatenate([i, f, o, g], axis=0)


def prepare_lstm_weights(w_ih, w_hh, b_ih, b_hh):
    """One-time weight prep (run in __init__, NOT per forward call)."""
    H = w_hh.shape[1]
    w_ih_t = _permute_gates_ifgo_to_ifog(w_ih).T                 # (I, 4H)
    w_hh_t = _permute_gates_ifgo_to_ifog(w_hh).T                 # (H, 4H)
    b = _permute_gates_ifgo_to_ifog(b_ih + b_hh).reshape(1, 4 * H)
    return (jnp.asarray(w_ih_t), jnp.asarray(w_hh_t), jnp.asarray(b))


@jax.jit
def lstm_forward_prepared(x, w_ih_t, w_hh_t, b):
    """Single-layer LSTM forward (batch_first) using pre-prepared weights.

    Returns (out, (h_n, c_n)) with torch.nn.LSTM semantics (zero initial state).
    """
    B, T, I = x.shape
    H = w_hh_t.shape[0]
    B_pad = max(8, ((B + 7) // 8) * 8)   # sublane-aligned batch

    # Pad batch to B_pad and flatten time-major so the pre-gates for timestep t
    # occupy the contiguous, vreg-aligned rows [t*B_pad, (t+1)*B_pad).  Under
    # jit the pad + transpose + reshape fuse into a single small copy.
    if B_pad != B:
        x = jnp.pad(x, ((0, B_pad - B), (0, 0), (0, 0)))
    x_tm = jnp.swapaxes(x, 0, 1).reshape(T * B_pad, I)

    slab = pl.pallas_call(
        _lstm_kernel,
        out_shape=jax.ShapeDtypeStruct((B_pad, (T + 1) * H), jnp.float32),
        grid=(1,),
        in_specs=[
            pl.BlockSpec((T * B_pad, I), lambda i: (0, 0)),
            pl.BlockSpec((I, 4 * H), lambda i: (0, 0)),
            pl.BlockSpec((H, 4 * H), lambda i: (0, 0)),
            pl.BlockSpec((1, 4 * H), lambda i: (0, 0)),
        ],
        out_specs=pl.BlockSpec((B_pad, (T + 1) * H), lambda i: (0, 0)),
        compiler_params=pltpu.CompilerParams(
            dimension_semantics=("arbitrary",)),
    )(x_tm, w_ih_t, w_hh_t, b)

    out = slab[:B, :T * H].reshape(B, T, H)
    h_n = out[:, T - 1, :][None]          # last hidden state == last output step
    c_n = slab[:B, T * H:][None]          # final cell state, folded into the slab
    return out, (h_n, c_n)


def lstm_reference(x, w_ih, w_hh, b_ih, b_hh):
    """Pure-JAX reference matching torch.nn.LSTM(batch_first=True), 1 layer."""
    B, T, I = x.shape
    H = w_hh.shape[1]

    def step(carry, x_t):
        h, c = carry
        gates = x_t @ w_ih.T + b_ih + h @ w_hh.T + b_hh
        i_g = jax.nn.sigmoid(gates[:, 0 * H:1 * H])
        f_g = jax.nn.sigmoid(gates[:, 1 * H:2 * H])
        g_g = jnp.tanh(gates[:, 2 * H:3 * H])
        o_g = jax.nn.sigmoid(gates[:, 3 * H:4 * H])
        c = f_g * c + i_g * g_g
        h = o_g * jnp.tanh(c)
        return (h, c), h

    h0 = jnp.zeros((B, H), jnp.float32)
    c0 = jnp.zeros((B, H), jnp.float32)
    (h_n, c_n), outs = lax.scan(step, (h0, c0), jnp.swapaxes(x, 0, 1))
    out = jnp.swapaxes(outs, 0, 1)
    return out, (h_n[None], c_n[None])


class ResnetBasedRNN:
    """Pallas-backed equivalent of the PyTorch module (num_layers=1)."""

    def __init__(self, key, embeddingnet=None, num_layers=1, dropout=0,
                 hidden_size=32, input_size=32):
        assert num_layers == 1, "only the single-layer LSTM is implemented"
        # dropout is a no-op for num_layers == 1 (matches nn.LSTM semantics).
        self.hidden_size = hidden_size
        self.input_size = input_size
        k = 1.0 / (hidden_size ** 0.5)
        ks = jax.random.split(key, 4)
        # Same shapes / init distribution as torch.nn.LSTM (uniform(-k, k)),
        # gate order [i, f, g, o] along the 4H axis.
        self.w_ih = jax.random.uniform(ks[0], (4 * hidden_size, input_size),
                                       jnp.float32, -k, k)
        self.w_hh = jax.random.uniform(ks[1], (4 * hidden_size, hidden_size),
                                       jnp.float32, -k, k)
        self.b_ih = jax.random.uniform(ks[2], (4 * hidden_size,),
                                       jnp.float32, -k, k)
        self.b_hh = jax.random.uniform(ks[3], (4 * hidden_size,),
                                       jnp.float32, -k, k)
        # One-time weight prep hoisted out of the per-call path (perf review).
        self.w_ih_t, self.w_hh_t, self.b = prepare_lstm_weights(
            self.w_ih, self.w_hh, self.b_ih, self.b_hh)

    def __call__(self, x):
        return lstm_forward_prepared(x, self.w_ih_t, self.w_hh_t, self.b)


if __name__ == "__main__":
    key = jax.random.PRNGKey(0)
    k_param, k_x = jax.random.split(key)

    B, T, I, H = 2, 8, 32, 32
    model = ResnetBasedRNN(k_param, hidden_size=H, input_size=I)
    x = jax.random.normal(k_x, (B, T, I), jnp.float32)

    out, (h_n, c_n) = model(x)
    jax.block_until_ready((out, h_n, c_n))

    # Correctness check against a pure-JAX reference of torch.nn.LSTM semantics.
    ref_out, (ref_h, ref_c) = lstm_reference(x, model.w_ih, model.w_hh,
                                             model.b_ih, model.b_hh)
    assert out.shape == (B, T, H)
    assert h_n.shape == (1, B, H) and c_n.shape == (1, B, H)
    assert jnp.allclose(out, ref_out, atol=1e-5, rtol=1e-5)
    assert jnp.allclose(h_n, ref_h, atol=1e-5, rtol=1e-5)
    assert jnp.allclose(c_n, ref_c, atol=1e-5, rtol=1e-5)

    print("KERNEL_OK")
</pallas_src>

<mosaic_0001>
module attributes {stable_mosaic.version = 11 : i64} {
  func.func @_lstm_kernel(%arg0: i32, %arg1: memref<64x32xf32, #tpu.memory_space<vmem>>, %arg2: memref<32x128xf32, #tpu.memory_space<vmem>>, %arg3: memref<32x128xf32, #tpu.memory_space<vmem>>, %arg4: memref<1x128xf32, #tpu.memory_space<vmem>>, %arg5: memref<8x288xf32, #tpu.memory_space<vmem>>) attributes {dimension_semantics = [#tpu.dimension_semantics<arbitrary>], iteration_bounds = array<i64: 1>, scalar_prefetch = 0 : i64, scratch_operands = 0 : i64, tpu.core_type = #tpu.core_type<tc>, window_params = [{pipeline_mode = #tpu.pipeline_mode<synchronous>, transform_indices = @transform_0, window_bounds = array<i64: 64, 32>}, {pipeline_mode = #tpu.pipeline_mode<synchronous>, transform_indices = @transform_1, window_bounds = array<i64: 32, 128>}, {pipeline_mode = #tpu.pipeline_mode<synchronous>, transform_indices = @transform_2, window_bounds = array<i64: 32, 128>}, {pipeline_mode = #tpu.pipeline_mode<synchronous>, transform_indices = @transform_3, window_bounds = array<i64: 1, 128>}, {pipeline_mode = #tpu.pipeline_mode<synchronous>, transform_indices = @transform_4, window_bounds = array<i64: 8, 288>}]} {
    %c0 = arith.constant 0 : index
    %c0_0 = arith.constant 0 : index
    %0 = vector.load %arg1[%c0, %c0_0] : memref<64x32xf32, #tpu.memory_space<vmem>>, vector<64x32xf32>
    %c0_1 = arith.constant 0 : index
    %c0_2 = arith.constant 0 : index
    %1 = vector.load %arg2[%c0_1, %c0_2] : memref<32x128xf32, #tpu.memory_space<vmem>>, vector<32x128xf32>
    %cst = arith.constant dense<0.000000e+00> : vector<64x128xf32>
    %2 = tpu.matmul %0, %1, %cst {dimension_numbers = #tpu.dot_dimension_numbers<[1], [0], [0], [1], [0, 0, 1, 1], [], []>} : vector<64x32xf32>, vector<32x128xf32>, vector<64x128xf32> -> vector<64x128xf32>
    %c0_3 = arith.constant 0 : index
    %c0_4 = arith.constant 0 : index
    %3 = vector.load %arg4[%c0_3, %c0_4] : memref<1x128xf32, #tpu.memory_space<vmem>>, vector<1x128xf32>
    %4 = vector.broadcast %3 : vector<1x128xf32> to vector<64x128xf32>
    %5 = arith.addf %2, %4 : vector<64x128xf32>
    %c0_5 = arith.constant 0 : index
    %c0_6 = arith.constant 0 : index
    %6 = vector.load %arg3[%c0_5, %c0_6] : memref<32x128xf32, #tpu.memory_space<vmem>>, vector<32x128xf32>
    %cst_7 = arith.constant 0.000000e+00 : f32
    %7 = vector.broadcast %cst_7 : f32 to vector<8x32xf32>
    %cst_8 = arith.constant 0.000000e+00 : f32
    %8 = vector.broadcast %cst_8 : f32 to vector<8x32xf32>
    %9 = vector.extract_strided_slice %5 {offsets = [0, 0], sizes = [8, 128], strides = [1, 1]} : vector<64x128xf32> to vector<8x128xf32>
    %cst_9 = arith.constant dense<0.000000e+00> : vector<8x128xf32>
    %10 = tpu.matmul %7, %6, %cst_9 {dimension_numbers = #tpu.dot_dimension_numbers<[1], [0], [0], [1], [0, 0, 1, 1], [], []>} : vector<8x32xf32>, vector<32x128xf32>, vector<8x128xf32> -> vector<8x128xf32>
    %11 = arith.addf %9, %10 : vector<8x128xf32>
    %12 = vector.extract_strided_slice %11 {offsets = [0, 0], sizes = [8, 96], strides = [1, 1]} : vector<8x128xf32> to vector<8x96xf32>
    %cst_10 = arith.constant 5.000000e-01 : f32
    %13 = vector.broadcast %cst_10 : f32 to vector<8x96xf32>
    %14 = arith.mulf %13, %12 : vector<8x96xf32>
    %15 = math.tanh %14 : vector<8x96xf32>
    %cst_11 = arith.constant 5.000000e-01 : f32
    %16 = vector.broadcast %cst_11 : f32 to vector<8x96xf32>
    %17 = arith.mulf %16, %15 : vector<8x96xf32>
    %cst_12 = arith.constant 5.000000e-01 : f32
    %18 = vector.broadcast %cst_12 : f32 to vector<8x96xf32>
    %19 = arith.addf %17, %18 : vector<8x96xf32>
    %20 = vector.extract_strided_slice %19 {offsets = [0, 0], sizes = [8, 32], strides = [1, 1]} : vector<8x96xf32> to vector<8x32xf32>
    %21 = vector.extract_strided_slice %19 {offsets = [0, 32], sizes = [8, 32], strides = [1, 1]} : vector<8x96xf32> to vector<8x32xf32>
    %22 = vector.extract_strided_slice %19 {offsets = [0, 64], sizes = [8, 32], strides = [1, 1]} : vector<8x96xf32> to vector<8x32xf32>
    %23 = vector.extract_strided_slice %11 {offsets = [0, 96], sizes = [8, 32], strides = [1, 1]} : vector<8x128xf32> to vector<8x32xf32>
    %24 = math.tanh %23 : vector<8x32xf32>
    %25 = arith.mulf %21, %8 : vector<8x32xf32>
    %26 = arith.mulf %20, %24 : vector<8x32xf32>
    %27 = arith.addf %25, %26 : vector<8x32xf32>
    %28 = math.tanh %27 : vector<8x32xf32>
    %29 = arith.mulf %22, %28 : vector<8x32xf32>
    %30 = vector.extract_strided_slice %5 {offsets = [8, 0], sizes = [8, 128], strides = [1, 1]} : vector<64x128xf32> to vector<8x128xf32>
    %cst_13 = arith.constant dense<0.000000e+00> : vector<8x128xf32>
    %31 = tpu.matmul %29, %6, %cst_13 {dimension_numbers = #tpu.dot_dimension_numbers<[1], [0], [0], [1], [0, 0, 1, 1], [], []>} : vector<8x32xf32>, vector<32x128xf32>, vector<8x128xf32> -> vector<8x128xf32>
    %32 = arith.addf %30, %31 : vector<8x128xf32>
    %33 = vector.extract_strided_slice %32 {offsets = [0, 0], sizes = [8, 96], strides = [1, 1]} : vector<8x128xf32> to vector<8x96xf32>
    %cst_14 = arith.constant 5.000000e-01 : f32
    %34 = vector.broadcast %cst_14 : f32 to vector<8x96xf32>
    %35 = arith.mulf %34, %33 : vector<8x96xf32>
    %36 = math.tanh %35 : vector<8x96xf32>
    %cst_15 = arith.constant 5.000000e-01 : f32
    %37 = vector.broadcast %cst_15 : f32 to vector<8x96xf32>
    %38 = arith.mulf %37, %36 : vector<8x96xf32>
    %cst_16 = arith.constant 5.000000e-01 : f32
    %39 = vector.broadcast %cst_16 : f32 to vector<8x96xf32>
    %40 = arith.addf %38, %39 : vector<8x96xf32>
    %41 = vector.extract_strided_slice %40 {offsets = [0, 0], sizes = [8, 32], strides = [1, 1]} : vector<8x96xf32> to vector<8x32xf32>
    %42 = vector.extract_strided_slice %40 {offsets = [0, 32], sizes = [8, 32], strides = [1, 1]} : vector<8x96xf32> to vector<8x32xf32>
    %43 = vector.extract_strided_slice %40 {offsets = [0, 64], sizes = [8, 32], strides = [1, 1]} : vector<8x96xf32> to vector<8x32xf32>
    %44 = vector.extract_strided_slice %32 {offsets = [0, 96], sizes = [8, 32], strides = [1, 1]} : vector<8x128xf32> to vector<8x32xf32>
    %45 = math.tanh %44 : vector<8x32xf32>
    %46 = arith.mulf %42, %27 : vector<8x32xf32>
    %47 = arith.mulf %41, %45 : vector<8x32xf32>
    %48 = arith.addf %46, %47 : vector<8x32xf32>
    %49 = math.tanh %48 : vector<8x32xf32>
    %50 = arith.mulf %43, %49 : vector<8x32xf32>
    %51 = vector.extract_strided_slice %5 {offsets = [16, 0], sizes = [8, 128], strides = [1, 1]} : vector<64x128xf32> to vector<8x128xf32>
    %cst_17 = arith.constant dense<0.000000e+00> : vector<8x128xf32>
    %52 = tpu.matmul %50, %6, %cst_17 {dimension_numbers = #tpu.dot_dimension_numbers<[1], [0], [0], [1], [0, 0, 1, 1], [], []>} : vector<8x32xf32>, vector<32x128xf32>, vector<8x128xf32> -> vector<8x128xf32>
    %53 = arith.addf %51, %52 : vector<8x128xf32>
    %54 = vector.extract_strided_slice %53 {offsets = [0, 0], sizes = [8, 96], strides = [1, 1]} : vector<8x128xf32> to vector<8x96xf32>
    %cst_18 = arith.constant 5.000000e-01 : f32
    %55 = vector.broadcast %cst_18 : f32 to vector<8x96xf32>
    %56 = arith.mulf %55, %54 : vector<8x96xf32>
    %57 = math.tanh %56 : vector<8x96xf32>
    %cst_19 = arith.constant 5.000000e-01 : f32
    %58 = vector.broadcast %cst_19 : f32 to vector<8x96xf32>
    %59 = arith.mulf %58, %57 : vector<8x96xf32>
    %cst_20 = arith.constant 5.000000e-01 : f32
    %60 = vector.broadcast %cst_20 : f32 to vector<8x96xf32>
    %61 = arith.addf %59, %60 : vector<8x96xf32>
    %62 = vector.extract_strided_slice %61 {offsets = [0, 0], sizes = [8, 32], strides = [1, 1]} : vector<8x96xf32> to vector<8x32xf32>
    %63 = vector.extract_strided_slice %61 {offsets = [0, 32], sizes = [8, 32], strides = [1, 1]} : vector<8x96xf32> to vector<8x32xf32>
    %64 = vector.extract_strided_slice %61 {offsets = [0, 64], sizes = [8, 32], strides = [1, 1]} : vector<8x96xf32> to vector<8x32xf32>
    %65 = vector.extract_strided_slice %53 {offsets = [0, 96], sizes = [8, 32], strides = [1, 1]} : vector<8x128xf32> to vector<8x32xf32>
    %66 = math.tanh %65 : vector<8x32xf32>
    %67 = arith.mulf %63, %48 : vector<8x32xf32>
    %68 = arith.mulf %62, %66 : vector<8x32xf32>
    %69 = arith.addf %67, %68 : vector<8x32xf32>
    %70 = math.tanh %69 : vector<8x32xf32>
    %71 = arith.mulf %64, %70 : vector<8x32xf32>
    %72 = vector.extract_strided_slice %5 {offsets = [24, 0], sizes = [8, 128], strides = [1, 1]} : vector<64x128xf32> to vector<8x128xf32>
    %cst_21 = arith.constant dense<0.000000e+00> : vector<8x128xf32>
    %73 = tpu.matmul %71, %6, %cst_21 {dimension_numbers = #tpu.dot_dimension_numbers<[1], [0], [0], [1], [0, 0, 1, 1], [], []>} : vector<8x32xf32>, vector<32x128xf32>, vector<8x128xf32> -> vector<8x128xf32>
    %74 = arith.addf %72, %73 : vector<8x128xf32>
    %75 = vector.extract_strided_slice %74 {offsets = [0, 0], sizes = [8, 96], strides = [1, 1]} : vector<8x128xf32> to vector<8x96xf32>
    %cst_22 = arith.constant 5.000000e-01 : f32
    %76 = vector.broadcast %cst_22 : f32 to vector<8x96xf32>
    %77 = arith.mulf %76, %75 : vector<8x96xf32>
    %78 = math.tanh %77 : vector<8x96xf32>
    %cst_23 = arith.constant 5.000000e-01 : f32
    %79 = vector.broadcast %cst_23 : f32 to vector<8x96xf32>
    %80 = arith.mulf %79, %78 : vector<8x96xf32>
    %cst_24 = arith.constant 5.000000e-01 : f32
    %81 = vector.broadcast %cst_24 : f32 to vector<8x96xf32>
    %82 = arith.addf %80, %81 : vector<8x96xf32>
    %83 = vector.extract_strided_slice %82 {offsets = [0, 0], sizes = [8, 32], strides = [1, 1]} : vector<8x96xf32> to vector<8x32xf32>
    %84 = vector.extract_strided_slice %82 {offsets = [0, 32], sizes = [8, 32], strides = [1, 1]} : vector<8x96xf32> to vector<8x32xf32>
    %85 = vector.extract_strided_slice %82 {offsets = [0, 64], sizes = [8, 32], strides = [1, 1]} : vector<8x96xf32> to vector<8x32xf32>
    %86 = vector.extract_strided_slice %74 {offsets = [0, 96], sizes = [8, 32], strides = [1, 1]} : vector<8x128xf32> to vector<8x32xf32>
    %87 = math.tanh %86 : vector<8x32xf32>
    %88 = arith.mulf %84, %69 : vector<8x32xf32>
    %89 = arith.mulf %83, %87 : vector<8x32xf32>
    %90 = arith.addf %88, %89 : vector<8x32xf32>
    %91 = math.tanh %90 : vector<8x32xf32>
    %92 = arith.mulf %85, %91 : vector<8x32xf32>
    %93 = vector.extract_strided_slice %5 {offsets = [32, 0], sizes = [8, 128], strides = [1, 1]} : vector<64x128xf32> to vector<8x128xf32>
    %cst_25 = arith.constant dense<0.000000e+00> : vector<8x128xf32>
    %94 = tpu.matmul %92, %6, %cst_25 {dimension_numbers = #tpu.dot_dimension_numbers<[1], [0], [0], [1], [0, 0, 1, 1], [], []>} : vector<8x32xf32>, vector<32x128xf32>, vector<8x128xf32> -> vector<8x128xf32>
    %95 = arith.addf %93, %94 : vector<8x128xf32>
    %96 = vector.extract_strided_slice %95 {offsets = [0, 0], sizes = [8, 96], strides = [1, 1]} : vector<8x128xf32> to vector<8x96xf32>
    %cst_26 = arith.constant 5.000000e-01 : f32
    %97 = vector.broadcast %cst_26 : f32 to vector<8x96xf32>
    %98 = arith.mulf %97, %96 : vector<8x96xf32>
    %99 = math.tanh %98 : vector<8x96xf32>
    %cst_27 = arith.constant 5.000000e-01 : f32
    %100 = vector.broadcast %cst_27 : f32 to vector<8x96xf32>
    %101 = arith.mulf %100, %99 : vector<8x96xf32>
    %cst_28 = arith.constant 5.000000e-01 : f32
    %102 = vector.broadcast %cst_28 : f32 to vector<8x96xf32>
    %103 = arith.addf %101, %102 : vector<8x96xf32>
    %104 = vector.extract_strided_slice %103 {offsets = [0, 0], sizes = [8, 32], strides = [1, 1]} : vector<8x96xf32> to vector<8x32xf32>
    %105 = vector.extract_strided_slice %103 {offsets = [0, 32], sizes = [8, 32], strides = [1, 1]} : vector<8x96xf32> to vector<8x32xf32>
    %106 = vector.extract_strided_slice %103 {offsets = [0, 64], sizes = [8, 32], strides = [1, 1]} : vector<8x96xf32> to vector<8x32xf32>
    %107 = vector.extract_strided_slice %95 {offsets = [0, 96], sizes = [8, 32], strides = [1, 1]} : vector<8x128xf32> to vector<8x32xf32>
    %108 = math.tanh %107 : vector<8x32xf32>
    %109 = arith.mulf %105, %90 : vector<8x32xf32>
    %110 = arith.mulf %104, %108 : vector<8x32xf32>
    %111 = arith.addf %109, %110 : vector<8x32xf32>
    %112 = math.tanh %111 : vector<8x32xf32>
    %113 = arith.mulf %106, %112 : vector<8x32xf32>
    %114 = vector.extract_strided_slice %5 {offsets = [40, 0], sizes = [8, 128], strides = [1, 1]} : vector<64x128xf32> to vector<8x128xf32>
    %cst_29 = arith.constant dense<0.000000e+00> : vector<8x128xf32>
    %115 = tpu.matmul %113, %6, %cst_29 {dimension_numbers = #tpu.dot_dimension_numbers<[1], [0], [0], [1], [0, 0, 1, 1], [], []>} : vector<8x32xf32>, vector<32x128xf32>, vector<8x128xf32> -> vector<8x128xf32>
    %116 = arith.addf %114, %115 : vector<8x128xf32>
    %117 = vector.extract_strided_slice %116 {offsets = [0, 0], sizes = [8, 96], strides = [1, 1]} : vector<8x128xf32> to vector<8x96xf32>
    %cst_30 = arith.constant 5.000000e-01 : f32
    %118 = vector.broadcast %cst_30 : f32 to vector<8x96xf32>
    %119 = arith.mulf %118, %117 : vector<8x96xf32>
    %120 = math.tanh %119 : vector<8x96xf32>
    %cst_31 = arith.constant 5.000000e-01 : f32
    %121 = vector.broadcast %cst_31 : f32 to vector<8x96xf32>
    %122 = arith.mulf %121, %120 : vector<8x96xf32>
    %cst_32 = arith.constant 5.000000e-01 : f32
    %123 = vector.broadcast %cst_32 : f32 to vector<8x96xf32>
    %124 = arith.addf %122, %123 : vector<8x96xf32>
    %125 = vector.extract_strided_slice %124 {offsets = [0, 0], sizes = [8, 32], strides = [1, 1]} : vector<8x96xf32> to vector<8x32xf32>
    %126 = vector.extract_strided_slice %124 {offsets = [0, 32], sizes = [8, 32], strides = [1, 1]} : vector<8x96xf32> to vector<8x32xf32>
    %127 = vector.extract_strided_slice %124 {offsets = [0, 64], sizes = [8, 32], strides = [1, 1]} : vector<8x96xf32> to vector<8x32xf32>
    %128 = vector.extract_strided_slice %116 {offsets = [0, 96], sizes = [8, 32], strides = [1, 1]} : vector<8x128xf32> to vector<8x32xf32>
    %129 = math.tanh %128 : vector<8x32xf32>
    %130 = arith.mulf %126, %111 : vector<8x32xf32>
    %131 = arith.mulf %125, %129 : vector<8x32xf32>
    %132 = arith.addf %130, %131 : vector<8x32xf32>
    %133 = math.tanh %132 : vector<8x32xf32>
    %134 = arith.mulf %127, %133 : vector<8x32xf32>
    %135 = vector.extract_strided_slice %5 {offsets = [48, 0], sizes = [8, 128], strides = [1, 1]} : vector<64x128xf32> to vector<8x128xf32>
    %cst_33 = arith.constant dense<0.000000e+00> : vector<8x128xf32>
    %136 = tpu.matmul %134, %6, %cst_33 {dimension_numbers = #tpu.dot_dimension_numbers<[1], [0], [0], [1], [0, 0, 1, 1], [], []>} : vector<8x32xf32>, vector<32x128xf32>, vector<8x128xf32> -> vector<8x128xf32>
    %137 = arith.addf %135, %136 : vector<8x128xf32>
    %138 = vector.extract_strided_slice %137 {offsets = [0, 0], sizes = [8, 96], strides = [1, 1]} : vector<8x128xf32> to vector<8x96xf32>
    %cst_34 = arith.constant 5.000000e-01 : f32
    %139 = vector.broadcast %cst_34 : f32 to vector<8x96xf32>
    %140 = arith.mulf %139, %138 : vector<8x96xf32>
    %141 = math.tanh %140 : vector<8x96xf32>
    %cst_35 = arith.constant 5.000000e-01 : f32
    %142 = vector.broadcast %cst_35 : f32 to vector<8x96xf32>
    %143 = arith.mulf %142, %141 : vector<8x96xf32>
    %cst_36 = arith.constant 5.000000e-01 : f32
    %144 = vector.broadcast %cst_36 : f32 to vector<8x96xf32>
    %145 = arith.addf %143, %144 : vector<8x96xf32>
    %146 = vector.extract_strided_slice %145 {offsets = [0, 0], sizes = [8, 32], strides = [1, 1]} : vector<8x96xf32> to vector<8x32xf32>
    %147 = vector.extract_strided_slice %145 {offsets = [0, 32], sizes = [8, 32], strides = [1, 1]} : vector<8x96xf32> to vector<8x32xf32>
    %148 = vector.extract_strided_slice %145 {offsets = [0, 64], sizes = [8, 32], strides = [1, 1]} : vector<8x96xf32> to vector<8x32xf32>
    %149 = vector.extract_strided_slice %137 {offsets = [0, 96], sizes = [8, 32], strides = [1, 1]} : vector<8x128xf32> to vector<8x32xf32>
    %150 = math.tanh %149 : vector<8x32xf32>
    %151 = arith.mulf %147, %132 : vector<8x32xf32>
    %152 = arith.mulf %146, %150 : vector<8x32xf32>
    %153 = arith.addf %151, %152 : vector<8x32xf32>
    %154 = math.tanh %153 : vector<8x32xf32>
    %155 = arith.mulf %148, %154 : vector<8x32xf32>
    %156 = vector.extract_strided_slice %5 {offsets = [56, 0], sizes = [8, 128], strides = [1, 1]} : vector<64x128xf32> to vector<8x128xf32>
    %cst_37 = arith.constant dense<0.000000e+00> : vector<8x128xf32>
    %157 = tpu.matmul %155, %6, %cst_37 {dimension_numbers = #tpu.dot_dimension_numbers<[1], [0], [0], [1], [0, 0, 1, 1], [], []>} : vector<8x32xf32>, vector<32x128xf32>, vector<8x128xf32> -> vector<8x128xf32>
    %158 = arith.addf %156, %157 : vector<8x128xf32>
    %159 = vector.extract_strided_slice %158 {offsets = [0, 0], sizes = [8, 96], strides = [1, 1]} : vector<8x128xf32> to vector<8x96xf32>
    %cst_38 = arith.constant 5.000000e-01 : f32
    %160 = vector.broadcast %cst_38 : f32 to vector<8x96xf32>
    %161 = arith.mulf %160, %159 : vector<8x96xf32>
    %162 = math.tanh %161 : vector<8x96xf32>
    %cst_39 = arith.constant 5.000000e-01 : f32
    %163 = vector.broadcast %cst_39 : f32 to vector<8x96xf32>
    %164 = arith.mulf %163, %162 : vector<8x96xf32>
    %cst_40 = arith.constant 5.000000e-01 : f32
    %165 = vector.broadcast %cst_40 : f32 to vector<8x96xf32>
    %166 = arith.addf %164, %165 : vector<8x96xf32>
    %167 = vector.extract_strided_slice %166 {offsets = [0, 0], sizes = [8, 32], strides = [1, 1]} : vector<8x96xf32> to vector<8x32xf32>
    %168 = vector.extract_strided_slice %166 {offsets = [0, 32], sizes = [8, 32], strides = [1, 1]} : vector<8x96xf32> to vector<8x32xf32>
    %169 = vector.extract_strided_slice %166 {offsets = [0, 64], sizes = [8, 32], strides = [1, 1]} : vector<8x96xf32> to vector<8x32xf32>
    %170 = vector.extract_strided_slice %158 {offsets = [0, 96], sizes = [8, 32], strides = [1, 1]} : vector<8x128xf32> to vector<8x32xf32>
    %171 = math.tanh %170 : vector<8x32xf32>
    %172 = arith.mulf %168, %153 : vector<8x32xf32>
    %173 = arith.mulf %167, %171 : vector<8x32xf32>
    %174 = arith.addf %172, %173 : vector<8x32xf32>
    %175 = math.tanh %174 : vector<8x32xf32>
    %176 = arith.mulf %169, %175 : vector<8x32xf32>
    %177 = tpu.concatenate %29, %50, %71, %92, %113, %134, %155, %176, %174 in 1 : vector<8x32xf32>, vector<8x32xf32>, vector<8x32xf32>, vector<8x32xf32>, vector<8x32xf32>, vector<8x32xf32>, vector<8x32xf32>, vector<8x32xf32>, vector<8x32xf32> -> vector<8x288xf32>
    %c0_41 = arith.constant 0 : index
    %c0_42 = arith.constant 0 : index
    %178 = vector.load %arg5[%c0_41, %c0_42] : memref<8x288xf32, #tpu.memory_space<vmem>>, vector<8x288xf32>
    tpu.vector_store %arg5[%c0_41, %c0_42], %177 {strides = array<i32>} : memref<8x288xf32, #tpu.memory_space<vmem>>, vector<8x288xf32>,
    return
  }
  func.func @transform_0(%arg0: i32) -> (i32, i32) {
    %c0_i32 = arith.constant 0 : i32
    %c0_i32_0 = arith.constant 0 : i32
    %c0_i32_1 = arith.constant 0 : i32
    return %c0_i32, %c0_i32_0 : i32, i32
  }
  func.func @transform_1(%arg0: i32) -> (i32, i32) {
    %c0_i32 = arith.constant 0 : i32
    %c0_i32_0 = arith.constant 0 : i32
    %c0_i32_1 = arith.constant 0 : i32
    return %c0_i32, %c0_i32_0 : i32, i32
  }
  func.func @transform_2(%arg0: i32) -> (i32, i32) {
    %c0_i32 = arith.constant 0 : i32
    %c0_i32_0 = arith.constant 0 : i32
    %c0_i32_1 = arith.constant 0 : i32
    return %c0_i32, %c0_i32_0 : i32, i32
  }
  func.func @transform_3(%arg0: i32) -> (i32, i32) {
    %c0_i32 = arith.constant 0 : i32
    %c0_i32_0 = arith.constant 0 : i32
    %c0_i32_1 = arith.constant 0 : i32
    return %c0_i32, %c0_i32_0 : i32, i32
  }
  func.func @transform_4(%arg0: i32) -> (i32, i32) {
    %c0_i32 = arith.constant 0 : i32
    %c0_i32_0 = arith.constant 0 : i32
    %c0_i32_1 = arith.constant 0 : i32
    return %c0_i32, %c0_i32_0 : i32, i32
  }
}

</mosaic_0001>

<bundles_post_ra>
// kernel: lstm_forward_prepared.1
= control target key start
LH: loop header
LB: loop body
LE: loop exit
PB: predicated region body
PF: predicated region fallthrough
CT: control target
= control target key end

     0   :  { %v1272_v2 = vmov 0.0|0.0   ;;  %vm36_vm0 = vcmask 261120   ;;  %vm1273_vm1 = vmmov 0   ;;  %v1274_v4 = vmov 0.0   ;;  %s1275_s9 = smov 32   ;;  %s1517_s1 = inlined_call_operand.vmem [shape: f32[32,128], index: 1, kind: input, shape index: {}]   ;;  %s1518_s2 = inlined_call_operand.vmem [shape: f32[32,128], index: 2, kind: input, shape index: {}]   ;;  %s1519_s0 = inlined_call_operand.vmem [shape: f32[64,32], index: 0, kind: input, shape index: {}]   ;;  %s1520_s3 = inlined_call_operand.vmem [shape: f32[1,128], index: 3, kind: input, shape index: {}]   ;;  %s1521_s4 = inlined_call_operand.vmem [shape: f32[8,288], index: 4, kind: output, shape index: {}]  }
   0x1   :  { %v25_v0 = vld [vmem:[%s1517_s1] sm:$0xff]  ;;  %v26_v1 = vld [vmem:[%s1517_s1 + $0x8] sm:$0xff]  ;;  %1170 = vmatprep.subr.bf16.mxu1 %v1272_v2  ;;  %1082 = vmatprep.mubr.msk.f32.mxu1 %vm1273_vm1, %v1274_v4  ;;  %v27_v7 = vld [vmem:[%s1517_s1 + $0x10] sm:$0xff]  ;;  %vm972_vm2 = vcmask 523264   ;;  %vm974_vm3 = vcmask 785408  }
   0x2   :  { %v166_v3 = vld [vmem:[%s1518_s2] sm:$0xff]  ;;  %v1162_v5 = vpack.c.bf16 %v26_v1, %v25_v0  ;;  %v167_v6 = vld [vmem:[%s1518_s2 + $0x8] sm:$0xff]  ;;  %v28_v8 = vld [vmem:[%s1517_s1 + $0x18] sm:$0xff] }
   0x3   :  { %v1324_v9 = vpack.c.bf16 %v167_v6, %v166_v3  ;;  %v1166_v10 = vpack.c.bf16 %v28_v8, %v27_v7  ;;  %v17_v11 = vld [vmem:[%s1519_s0] sm:$0xff]  ;;  %v168_v12 = vld [vmem:[%s1518_s2 + $0x10] sm:$0xff]  ;;  %v169_v13 = vld [vmem:[%s1518_s2 + $0x18] sm:$0xff] }
   0x4   :  { %1163 = vmatprep.subr.bf16.mxu0 %v1162_v5  ;;  %1062 = vmatprep.mubr.msk.f32.mxu0 %vm36_vm0, %v17_v11  ;;  %v1337_v14 = vpack.c.bf16 %v169_v13, %v168_v12  ;;  %v18_v15 = vld [vmem:[%s1519_s0 + $0x8] sm:$0xff]  ;;  %v1361_v16 = vld [vmem:[%s1520_s3] ss:$0 sm:$0xff]  ;;  %s1276_s3 = smov 64   ;;  %v19_v51 = vld [vmem:[%s1519_s0 + $0x10] sm:$0xff] }
   0x5   :  { %1165 = vmatpush3.bf16.msra.mxu0 %v1162_v5  ;;  %1172 = vmatpush3.bf16.msra.mxu1 %v1324_v9  ;;  %v20_v52 = vld [vmem:[%s1519_s0 + $0x18] sm:$0xff]  ;;  %v21_v53 = vld [vmem:[%s1519_s0 + $0x20] sm:$0xff]  ;;  %v22_v54 = vld [vmem:[%s1519_s0 + $0x28] sm:$0xff] }
   0x6   :  { %1167 = vmatprep.subr.bf16.mxu0 %v1166_v10  ;;  %1173 = vmatprep.subr.bf16.mxu1 %v1272_v2  ;;  %v23_v55 = vld [vmem:[%s1519_s0 + $0x30] sm:$0xff]  ;;  %v24_v56 = vld [vmem:[%s1519_s0 + $0x38] sm:$0xff]  ;;  %s1277_s0 = smov 96  }
   0x9   :  { %1169 = vmatpush3.bf16.msra.mxu0 %v1166_v10  ;;  %1175 = vmatpush3.bf16.msra.mxu1 %v1337_v14 }
   0xa   :  { %1176 = vmatprep.subr.bf16.mxu1 %v1272_v2  ;;  %1182 = vmatprep.subr.bf16.mxu0 %v1272_v2 }
   0xc   :  { %1063 = vmatmul.mubr.msk.f32.vlgmr.msra.gmra.mrb[0].mxu0 %vm36_vm0, %v18_v15  ;;  %1083 = vmatmul.mubr.f32.vlgmr.msra.gmra.mrb[0].mxu1 %v1274_v4 }
   0xd   :  { %1178 = vmatpush3.bf16.msra.mxu1 %v1324_v9  ;;  %1093 = vmatprep.mubr.msk.f32.mxu1 %vm1273_vm1, %v1274_v4 }
   0xe   :  { %1179 = vmatprep.subr.bf16.mxu1 %v1272_v2  ;;  %1184 = vmatpush3.bf16.msra.mxu0 %v1324_v9 }
   0xf   :  { %1185 = vmatprep.subr.bf16.mxu0 %v1272_v2  ;;  %1065 = vmatprep.mubr.msk.f32.mxu0 %vm36_vm0, %v19_v51 }
  0x10   :  { %1066 = vmatmul.mubr.msk.f32.gmra.mrb[2].mxu0 %vm36_vm0, %v20_v52 }
  0x11   :  { %1181 = vmatpush3.bf16.msra.mxu1 %v1337_v14  ;;  %1068 = vmatprep.mubr.msk.f32.mxu0 %vm36_vm0, %v21_v53 }
  0x12   :  { %1187 = vmatpush3.bf16.msra.mxu0 %v1337_v14  ;;  %1188 = vmatprep.subr.bf16.mxu1 %v1272_v2 }
  0x13   :  { %1194 = vmatprep.subr.bf16.mxu0 %v1272_v2 }
  0x14   :  { %1069 = vmatmul.mubr.msk.f32.gmra.mrb[4].mxu0 %vm36_vm0, %v22_v54 }
  0x15   :  { %1071 = vmatprep.mubr.msk.f32.mxu0 %vm36_vm0, %v23_v55 }
  0x18   :  { %1072 = vmatmul.mubr.msk.f32.gmra.mrb[6].mxu0 %vm36_vm0, %v24_v56 }
  0x19   :  { %1104 = vmatprep.mubr.msk.f32.mxu0 %vm1273_vm1, %v1274_v4 }
  0xdf   :  { %v1064_v17 = vpop.f32.mrb[0].mxu0  ;;  %v239_v18 = vpop.f32.mrb[0].mxu1 }
  0xe0   :  { %v127_v19 = vpop.f32.mrb[1].mxu0  ;;  %v1084_v20 = vpop.f32.mrb[1].mxu1  ;;  %v133_v37 = vadd.f32 %v1064_v17, %v1361_v16 }
  0xe1   :  { %v128_v21 = vadd.f32 %v1361_v16, %v127_v19 }
  0xe3   :  { %v243_v22 = vadd.f32 %v239_v18, %v128_v21  ;;  %v1067_v60 = vpop.f32.mrb[2].mxu0 }
  0xe4   :  { %v137_v61 = vpop.f32.mrb[3].mxu0 }
  0xe5   :  { %1224 = vtanh.f32 %v243_v22  ;;  %v244_v24 = vmul.f32 0.5, %v243_v22  ;;  %v138_v5 = vadd.f32 %v1361_v16, %v137_v61 }
  0xe7   :  { %1226 = vtanh.f32 %v244_v24  ;;  %v1412_v62 = vpop.f32.mrb[4].mxu0 }
  0xe8   :  { %v1414_v63 = vpop.f32.mrb[5].mxu0 }
  0xeb   :  { %v1416_v0 = vpop.f32.mrb[6].mxu0 }
  0xec   :  { %v1418_v1 = vpop.f32.mrb[7].mxu0 }
  0xef   :  { %v1225_v23 = vpop.eup %1224 }
  0xf0   :  { %251 = vrot.lane.b32.xlu0 %v1225_v23, %s1275_s9 }
  0xf1   :  { %v1227_v25 = vpop.eup %1226 }
  0xf2   :  { %v246_v26 = vmul.f32 0.5, %v1227_v25 }
  0xf4   :  { %v247_v27 = vadd.f32 0.5, %v246_v26  ;;  %v143_v26 = vadd.f32 %v1067_v60, %v1361_v16 }
  0xf6   :  { %v249_v30 = vmul.f32 0.0, %v247_v27 }
 0x162   :  { %v252_v28 = vpop.permute.xlu0 %251 }
 0x163   :  { %v254_v29 = vmul.f32 %v252_v28, %v247_v27 }
 0x165   :  { %256 = vrot.lane.b32.xlu0 %v254_v29, %s1275_s9 }
 0x1d7   :  { %v257_v31 = vpop.permute.xlu0 %256 }
 0x1d8   :  { %v259_v32 = vadd.f32 %v257_v31, %v249_v30 }
 0x1da   :  { %1228 = vtanh.f32 %v259_v32 }
 0x1e4   :  { %v1229_v33 = vpop.eup %1228 }
 0x1e5   :  { %262 = vrot.lane.b32.xlu1 %v1229_v33, %s1275_s9 }
 0x257   :  { %v263_v34 = vpop.permute.xlu1 %262 }
 0x258   :  { %v265_v35 = vmul.f32 %v263_v34, %v247_v27 }
 0x25a   :  { %267 = vrot.lane.b32.xlu1 %v265_v35, %s1276_s3 }
 0x2cc   :  { %v1368_v36 = vpop.permute.xlu1 %267 }
 0x2cd   :  { %1094 = vmatmul.mubr.msk.f32.vlgmr.msra.gmra.mrb[2].mxu1 %vm36_vm0, %v1368_v36 }
 0x2ce   :  { %1190 = vmatpush3.bf16.msra.mxu1 %v1324_v9  ;;  %1115 = vmatprep.mubr.msk.f32.mxu1 %vm1273_vm1, %v1274_v4 }
 0x2cf   :  { %1191 = vmatprep.subr.bf16.mxu1 %v1272_v2 }
 0x2d2   :  { %1193 = vmatpush3.bf16.msra.mxu1 %v1337_v14 }
 0x2d3   :  { %1200 = vmatprep.subr.bf16.mxu1 %v1272_v2 }
 0x3a0   :  { %v337_v38 = vpop.f32.mrb[2].mxu1 }
 0x3a1   :  { %v341_v39 = vadd.f32 %v337_v38, %v133_v37  ;;  %v1095_v40 = vpop.f32.mrb[3].mxu1 }
 0x3a3   :  { %1230 = vtanh.f32 %v341_v39  ;;  %v342_v42 = vmul.f32 0.5, %v341_v39 }
 0x3a5   :  { %1232 = vtanh.f32 %v342_v42 }
 0x3ad   :  { %v1231_v41 = vpop.eup %1230 }
 0x3ae   :  { %349 = vrot.lane.b32.xlu0 %v1231_v41, %s1275_s9 }
 0x3af   :  { %v1233_v43 = vpop.eup %1232 }
 0x3b0   :  { %v344_v44 = vmul.f32 0.5, %v1233_v43 }
 0x3b2   :  { %v345_v45 = vadd.f32 0.5, %v344_v44 }
 0x3b4   :  { %v347_v48 = vmul.f32 %v345_v45, %v259_v32 }
 0x420   :  { %v350_v46 = vpop.permute.xlu0 %349 }
 0x421   :  { %v352_v47 = vmul.f32 %v350_v46, %v345_v45 }
 0x423   :  { %354 = vrot.lane.b32.xlu1 %v352_v47, %s1275_s9 }
 0x495   :  { %v355_v49 = vpop.permute.xlu1 %354 }
 0x496   :  { %v357_v50 = vadd.f32 %v355_v49, %v347_v48 }
 0x498   :  { %1234 = vtanh.f32 %v357_v50 }
 0x4a2   :  { %v1235_v57 = vpop.eup %1234 }
 0x4a3   :  { %360 = vrot.lane.b32.xlu0 %v1235_v57, %s1275_s9 }
 0x515   :  { %v361_v58 = vpop.permute.xlu0 %360 }
 0x516   :  { %v1408_v59 = vmul.f32 %v361_v58, %v345_v45  ;;  %v148_v45 = vadd.f32 %v1361_v16, %v1414_v63 }
 0x518   :  { %365 = vrot.lane.b32.xlu1 %v1408_v59, %s1276_s3 }
 0x58a   :  { %v366_v3 = vpop.permute.xlu1 %365 }
 0x58b   :  { %1105 = vmatmul.mubr.msk.f32.vlgmr.msra.gmra.mrb[8].mxu0 %vm36_vm0, %v366_v3 }
 0x58c   :  { %1196 = vmatpush3.bf16.msra.mxu0 %v1324_v9  ;;  %1126 = vmatprep.mubr.msk.f32.mxu0 %vm1273_vm1, %v1274_v4 }
 0x58d   :  { %1197 = vmatprep.subr.bf16.mxu0 %v1272_v2 }
 0x590   :  { %1199 = vmatpush3.bf16.msra.mxu0 %v1337_v14 }
 0x591   :  { %1206 = vmatprep.subr.bf16.mxu0 %v1272_v2 }
 0x65e   :  { %v435_v6 = vpop.f32.mrb[8].mxu0 }
 0x65f   :  { %v439_v7 = vadd.f32 %v435_v6, %v138_v5  ;;  %v1106_v8 = vpop.f32.mrb[9].mxu0  ;;  %v153_v5 = vadd.f32 %v1412_v62, %v1361_v16 }
 0x661   :  { %1236 = vtanh.f32 %v439_v7  ;;  %v440_v11 = vmul.f32 0.5, %v439_v7 }
 0x663   :  { %1238 = vtanh.f32 %v440_v11 }
 0x66b   :  { %v1237_v10 = vpop.eup %1236 }
 0x66c   :  { %447 = vrot.lane.b32.xlu0 %v1237_v10, %s1275_s9 }
 0x66d   :  { %v1239_v12 = vpop.eup %1238 }
 0x66e   :  { %v442_v13 = vmul.f32 0.5, %v1239_v12 }
 0x670   :  { %v443_v15 = vadd.f32 0.5, %v442_v13 }
 0x672   :  { %v445_v19 = vmul.f32 %v443_v15, %v357_v50 }
 0x6de   :  { %v448_v17 = vpop.permute.xlu0 %447 }
 0x6df   :  { %v450_v18 = vmul.f32 %v448_v17, %v443_v15 }
 0x6e1   :  { %452 = vrot.lane.b32.xlu1 %v450_v18, %s1275_s9 }
 0x753   :  { %v453_v20 = vpop.permute.xlu1 %452 }
 0x754   :  { %v455_v21 = vadd.f32 %v453_v20, %v445_v19 }
 0x756   :  { %1240 = vtanh.f32 %v455_v21 }
 0x760   :  { %v1241_v22 = vpop.eup %1240 }
 0x761   :  { %458 = vrot.lane.b32.xlu0 %v1241_v22, %s1275_s9 }
 0x7d3   :  { %v459_v23 = vpop.permute.xlu0 %458 }
 0x7d4   :  { %v1431_v24 = vmul.f32 %v459_v23, %v443_v15 }
 0x7d6   :  { %463 = vrot.lane.b32.xlu1 %v1431_v24, %s1276_s3 }
 0x848   :  { %v464_v25 = vpop.permute.xlu1 %463 }
 0x849   :  { %1116 = vmatmul.mubr.msk.f32.vlgmr.msra.gmra.mrb[4].mxu1 %vm36_vm0, %v464_v25 }
 0x84a   :  { %1202 = vmatpush3.bf16.msra.mxu1 %v1324_v9  ;;  %1137 = vmatprep.mubr.msk.f32.mxu1 %vm1273_vm1, %v1274_v4 }
 0x84b   :  { %1203 = vmatprep.subr.bf16.mxu1 %v1272_v2 }
 0x84e   :  { %1205 = vmatpush3.bf16.msra.mxu1 %v1337_v14 }
 0x84f   :  { %1212 = vmatprep.subr.bf16.mxu1 %v1272_v2 }
 0x91c   :  { %v533_v27 = vpop.f32.mrb[4].mxu1 }
 0x91d   :  { %v537_v28 = vadd.f32 %v533_v27, %v143_v26  ;;  %v1117_v29 = vpop.f32.mrb[5].mxu1 }
 0x91f   :  { %1242 = vtanh.f32 %v537_v28  ;;  %v538_v31 = vmul.f32 0.5, %v537_v28 }
 0x921   :  { %1244 = vtanh.f32 %v538_v31 }
 0x929   :  { %v1243_v30 = vpop.eup %1242 }
 0x92a   :  { %545 = vrot.lane.b32.xlu0 %v1243_v30, %s1275_s9 }
 0x92b   :  { %v1245_v32 = vpop.eup %1244 }
 0x92c   :  { %v540_v33 = vmul.f32 0.5, %v1245_v32 }
 0x92e   :  { %v541_v34 = vadd.f32 0.5, %v540_v33 }
 0x930   :  { %v543_v38 = vmul.f32 %v541_v34, %v455_v21  ;;  %v158_v21 = vadd.f32 %v1361_v16, %v1418_v1 }
 0x99c   :  { %v546_v35 = vpop.permute.xlu0 %545 }
 0x99d   :  { %v548_v37 = vmul.f32 %v546_v35, %v541_v34 }
 0x99f   :  { %550 = vrot.lane.b32.xlu1 %v548_v37, %s1275_s9 }
 0xa11   :  { %v551_v39 = vpop.permute.xlu1 %550 }
 0xa12   :  { %v553_v40 = vadd.f32 %v551_v39, %v543_v38 }
 0xa14   :  { %1246 = vtanh.f32 %v553_v40 }
 0xa1e   :  { %v1247_v41 = vpop.eup %1246 }
 0xa1f   :  { %556 = vrot.lane.b32.xlu0 %v1247_v41, %s1275_s9 }
 0xa91   :  { %v557_v42 = vpop.permute.xlu0 %556 }
 0xa92   :  { %v1446_v43 = vmul.f32 %v557_v42, %v541_v34 }
 0xa94   :  { %561 = vrot.lane.b32.xlu1 %v1446_v43, %s1276_s3 }
 0xb06   :  { %v562_v44 = vpop.permute.xlu1 %561 }
 0xb07   :  { %1127 = vmatmul.mubr.msk.f32.vlgmr.msra.gmra.mrb[10].mxu0 %vm36_vm0, %v562_v44 }
 0xb08   :  { %1208 = vmatpush3.bf16.msra.mxu0 %v1324_v9  ;;  %1148 = vmatprep.mubr.msk.f32.mxu0 %vm1273_vm1, %v1274_v4 }
 0xb09   :  { %1209 = vmatprep.subr.bf16.mxu0 %v1272_v2 }
 0xb0c   :  { %1211 = vmatpush3.bf16.msra.mxu0 %v1337_v14 }
 0xbda   :  { %v631_v46 = vpop.f32.mrb[10].mxu0 }
 0xbdb   :  { %v635_v47 = vadd.f32 %v631_v46, %v148_v45  ;;  %v1128_v48 = vpop.f32.mrb[11].mxu0 }
 0xbdd   :  { %1248 = vtanh.f32 %v635_v47  ;;  %v636_v50 = vmul.f32 0.5, %v635_v47 }
 0xbdf   :  { %1250 = vtanh.f32 %v636_v50 }
 0xbe7   :  { %v1249_v49 = vpop.eup %1248 }
 0xbe8   :  { %643 = vrot.lane.b32.xlu0 %v1249_v49, %s1275_s9 }
 0xbe9   :  { %v1251_v51 = vpop.eup %1250 }
 0xbea   :  { %v638_v52 = vmul.f32 0.5, %v1251_v51 }
 0xbec   :  { %v639_v53 = vadd.f32 0.5, %v638_v52 }
 0xbee   :  { %v641_v56 = vmul.f32 %v639_v53, %v553_v40  ;;  %v163_v40 = vadd.f32 %v1416_v0, %v1361_v16 }
 0xc5a   :  { %v644_v54 = vpop.permute.xlu0 %643 }
 0xc5b   :  { %v646_v55 = vmul.f32 %v644_v54, %v639_v53 }
 0xc5d   :  { %648 = vrot.lane.b32.xlu1 %v646_v55, %s1275_s9 }
 0xccf   :  { %v649_v57 = vpop.permute.xlu1 %648 }
 0xcd0   :  { %v651_v58 = vadd.f32 %v649_v57, %v641_v56 }
 0xcd2   :  { %1252 = vtanh.f32 %v651_v58 }
 0xcdc   :  { %v1253_v60 = vpop.eup %1252 }
 0xcdd   :  { %654 = vrot.lane.b32.xlu0 %v1253_v60, %s1275_s9 }
 0xd4f   :  { %v655_v61 = vpop.permute.xlu0 %654 }
 0xd50   :  { %v657_v63 = vmul.f32 %v655_v61, %v639_v53 }
 0xd52   :  { %659 = vrot.lane.b32.xlu1 %v657_v63, %s1276_s3 }
 0xdc4   :  { %v1462_v3 = vpop.permute.xlu1 %659 }
 0xdc5   :  { %1138 = vmatmul.mubr.msk.f32.vlgmr.msra.gmra.mrb[6].mxu1 %vm36_vm0, %v1462_v3 }
 0xdc6   :  { %1214 = vmatpush3.bf16.msra.mxu1 %v1324_v9  ;;  %1159 = vmatprep.mubr.msk.f32.mxu1 %vm1273_vm1, %v1274_v4 }
 0xdc7   :  { %1215 = vmatprep.subr.bf16.mxu1 %v1272_v2 }
 0xdca   :  { %1217 = vmatpush3.bf16.msra.mxu1 %v1337_v14 }
 0xe98   :  { %v729_v6 = vpop.f32.mrb[6].mxu1 }
 0xe99   :  { %v733_v7 = vadd.f32 %v729_v6, %v153_v5  ;;  %v1139_v8 = vpop.f32.mrb[7].mxu1 }
 0xe9b   :  { %1254 = vtanh.f32 %v733_v7  ;;  %v734_v11 = vmul.f32 0.5, %v733_v7 }
 0xe9d   :  { %1256 = vtanh.f32 %v734_v11 }
 0xea5   :  { %v1255_v10 = vpop.eup %1254 }
 0xea6   :  { %741 = vrot.lane.b32.xlu0 %v1255_v10, %s1275_s9 }
 0xea7   :  { %v1257_v9 = vpop.eup %1256 }
 0xea8   :  { %v736_v12 = vmul.f32 0.5, %v1257_v9 }
 0xeaa   :  { %v737_v13 = vadd.f32 0.5, %v736_v12 }
 0xeac   :  { %v739_v2 = vmul.f32 %v737_v13, %v651_v58 }
 0xf18   :  { %v742_v4 = vpop.permute.xlu0 %741 }
 0xf19   :  { %v744_v15 = vmul.f32 %v742_v4, %v737_v13 }
 0xf1b   :  { %746 = vrot.lane.b32.xlu1 %v744_v15, %s1275_s9 }
 0xf8d   :  { %v747_v14 = vpop.permute.xlu1 %746 }
 0xf8e   :  { %v749_v17 = vadd.f32 %v747_v14, %v739_v2 }
 0xf90   :  { %1258 = vtanh.f32 %v749_v17 }
 0xf9a   :  { %v1259_v62 = vpop.eup %1258 }
 0xf9b   :  { %752 = vrot.lane.b32.xlu0 %v1259_v62, %s1275_s9 }
0x100d   :  { %v753_v18 = vpop.permute.xlu0 %752 }
0x100e   :  { %v1476_v19 = vmul.f32 %v753_v18, %v737_v13 }
0x1010   :  { %757 = vrot.lane.b32.xlu1 %v1476_v19, %s1276_s3 }
0x1082   :  { %v758_v20 = vpop.permute.xlu1 %757 }
0x1083   :  { %1149 = vmatmul.mubr.msk.f32.vlgmr.msra.gmra.mrb[12].mxu0 %vm36_vm0, %v758_v20 }
0x1156   :  { %v827_v22 = vpop.f32.mrb[12].mxu0 }
0x1157   :  { %v831_v23 = vadd.f32 %v827_v22, %v158_v21  ;;  %v1150_v25 = vpop.f32.mrb[13].mxu0 }
0x1159   :  { %1260 = vtanh.f32 %v831_v23  ;;  %v832_v27 = vmul.f32 0.5, %v831_v23 }
0x115b   :  { %1262 = vtanh.f32 %v832_v27 }
0x1163   :  { %v1261_v26 = vpop.eup %1260 }
0x1164   :  { %839 = vrot.lane.b32.xlu0 %v1261_v26, %s1275_s9 }
0x1165   :  { %v1263_v28 = vpop.eup %1262 }
0x1166   :  { %v834_v29 = vmul.f32 0.5, %v1263_v28 }
0x1168   :  { %v835_v30 = vadd.f32 0.5, %v834_v29 }
0x116a   :  { %v837_v33 = vmul.f32 %v835_v30, %v749_v17 }
0x11d6   :  { %v840_v31 = vpop.permute.xlu0 %839 }
0x11d7   :  { %v842_v32 = vmul.f32 %v840_v31, %v835_v30 }
0x11d9   :  { %844 = vrot.lane.b32.xlu1 %v842_v32, %s1275_s9 }
0x124b   :  { %v845_v34 = vpop.permute.xlu1 %844 }
0x124c   :  { %v847_v35 = vadd.f32 %v845_v34, %v837_v33 }
0x124e   :  { %1264 = vtanh.f32 %v847_v35 }
0x1258   :  { %v1265_v1 = vpop.eup %1264 }
0x1259   :  { %850 = vrot.lane.b32.xlu0 %v1265_v1, %s1275_s9 }
0x12cb   :  { %v851_v37 = vpop.permute.xlu0 %850 }
0x12cc   :  { %v853_v38 = vmul.f32 %v851_v37, %v835_v30 }
0x12ce   :  { %855 = vrot.lane.b32.xlu1 %v853_v38, %s1276_s3 }
0x1340   :  { %v856_v39 = vpop.permute.xlu1 %855 }
0x1341   :  { %1160 = vmatmul.mubr.msk.f32.vlgmr.msra.gmra.mrb[8].mxu1 %vm36_vm0, %v856_v39 }
0x1414   :  { %v925_v41 = vpop.f32.mrb[8].mxu1 }
0x1415   :  { %v929_v42 = vadd.f32 %v925_v41, %v163_v40  ;;  %v1161_v44 = vpop.f32.mrb[9].mxu1 }
0x1417   :  { %1266 = vtanh.f32 %v929_v42  ;;  %v930_v46 = vmul.f32 0.5, %v929_v42 }
0x1419   :  { %1268 = vtanh.f32 %v930_v46 }
0x1421   :  { %v1267_v45 = vpop.eup %1266 }
0x1422   :  { %937 = vrot.lane.b32.xlu0 %v1267_v45, %s1275_s9 }
0x1423   :  { %v1269_v47 = vpop.eup %1268 }
0x1424   :  { %v932_v48 = vmul.f32 0.5, %v1269_v47 }
0x1426   :  { %v933_v49 = vadd.f32 0.5, %v932_v48 }
0x1428   :  { %v935_v16 = vmul.f32 %v933_v49, %v847_v35 }
0x1494   :  { %v938_v50 = vpop.permute.xlu0 %937 }
0x1495   :  { %v940_v51 = vmul.f32 %v938_v50, %v933_v49 }
0x1497   :  { %942 = vrot.lane.b32.xlu1 %v940_v51, %s1275_s9 }
0x149b   :  { %953 = vrot.lane.b32.xlu1 %v1408_v59, %s1277_s0 }
0x149f   :  { %956 = vrot.lane.b32.xlu1 %v1446_v43, %s1275_s9 }
0x1509   :  { %v943_v0 = vpop.permute.xlu1 %942 }
0x150a   :  { %v945_v52 = vadd.f32 %v943_v0, %v935_v16 }
0x150c   :  { %1270 = vtanh.f32 %v945_v52  ;;  %968 = vrot.lane.b32.xlu1 %v945_v52, %s1277_s0 }
0x150d   :  { %v954_v53 = vpop.permute.xlu1 %953 }
0x150e   :  { %v971_v54 = vsel %vm36_vm0, %v1368_v36, %v954_v53 }
0x150f   :  { %v973_v55 = vsel %vm972_vm2, %v971_v54, %v1431_v24 }
0x1511   :  { %v957_v56 = vpop.permute.xlu1 %956 }
0x1512   :  { %v975_v59 = vsel %vm974_vm3, %v973_v55, %v957_v56 }
0x1513   :  { %979 = vst [vmem:[%s1521_s4] sm:$0xff] %v975_v59 }
0x1516   :  { %v1271_v43 = vpop.eup %1270 }
0x1517   :  { %948 = vrot.lane.b32.xlu0 %v1271_v43, %s1275_s9 }
0x151b   :  { %960 = vrot.lane.b32.xlu0 %v1476_v19, %s1277_s0 }
0x157e   :  { %v969_v57 = vpop.permute.xlu1 %968 }
0x157f   :  { %981 = vst.msk [vmem:[%s1521_s4 + $0x10] sm:$0xff] %vm36_vm0, %v969_v57 }
0x1589   :  { %v949_v36 = vpop.permute.xlu0 %948 }
0x158a   :  { %v951_v24 = vmul.f32 %v949_v36, %v933_v49 }
0x158c   :  { %964 = vrot.lane.b32.xlu0 %v951_v24, %s1275_s9 }
0x158d   :  { %v961_v58 = vpop.permute.xlu0 %960 }
0x158e   :  { %v976_v60 = vsel %vm36_vm0, %v1462_v3, %v961_v58 }
0x158f   :  { %v977_v61 = vsel %vm972_vm2, %v976_v60, %v853_v38 }
0x15fe   :  { %v965_v63 = vpop.permute.xlu0 %964 }
0x15ff   :  { %v978_v5 = vsel %vm974_vm3, %v977_v61, %v965_v63 }
0x1600   :  { %980 = vst [vmem:[%s1521_s4 + $0x8] sm:$0xff] %v978_v5 }

</bundles_post_ra>
